<compile_context>
chip_gen: v7x
topology: tpu7x:2x2x1
jax: 0.10.0
libtpu: 0.0.40
codegen_flags: <defaults>
</compile_context>

<pallas_src>
import functools

import numpy as np
import jax
import jax.numpy as jnp
from jax import lax
from jax.experimental import pallas as pl
from jax.experimental.pallas import tpu as pltpu

EPS = 1e-5
_MASK_VALUE = -1e30


def _round_up(x, m):
    return (x + m - 1) // m * m


def _nchw_to_flat(x):
    b, c, h, w = x.shape
    return jnp.transpose(x, (0, 2, 3, 1)).reshape(b, h * w, c)


def _flat_to_nchw(x, h, w):
    b, n, c = x.shape
    return jnp.transpose(x.reshape(b, h, w, c), (0, 3, 1, 2))


# ----------------------------------------------------------------------------
# Flash-attention kernel over pre-projected F/G/V + attended mean/std +
# mean-variance-normalized content blend.
# ----------------------------------------------------------------------------
def _adaattn_kernel(f_ref, g_ref, v_ref, c_ref, cmean_ref, cistd_ref,
                    o_ref,
                    m_sc, l_sc, accm_sc, acc2_sc,
                    *, matmul_dtype):
    ki = pl.program_id(2)
    nk = pl.num_programs(2)

    @pl.when(ki == 0)
    def _init():
        m_sc[...] = jnp.full_like(m_sc, -jnp.inf)
        l_sc[...] = jnp.zeros_like(l_sc)
        accm_sc[...] = jnp.zeros_like(accm_sc)
        acc2_sc[...] = jnp.zeros_like(acc2_sc)

    # Scores for this (query tile, style tile): F @ G^T.  F/G/V arrive already
    # projected and in matmul_dtype (no per-iteration projections or casts).
    # Padded style columns are masked via a mask channel baked into F/G in
    # HBM, so no in-kernel masking is needed.
    s = lax.dot_general(f_ref[...], g_ref[...],
                        (((1,), (1,)), ((), ())),
                        preferred_element_type=jnp.float32)       # (tq, tk)

    # Online softmax update — normalization deferred to finalize.
    m_prev = m_sc[...]
    m_new = jnp.maximum(m_prev, jnp.max(s, axis=-1, keepdims=True))
    alpha = jnp.exp(m_prev - m_new)
    p = jnp.exp(s - m_new)
    l_sc[...] = alpha * l_sc[...] + jnp.sum(p, axis=-1, keepdims=True)

    p_mm = p.astype(matmul_dtype)
    v = v_ref[...]
    # Two PV dots into separate accumulators (no (tk, 2*Cp) concat copy).
    accm_sc[...] = alpha * accm_sc[...] + jnp.dot(
        p_mm, v, preferred_element_type=jnp.float32)
    acc2_sc[...] = alpha * acc2_sc[...] + jnp.dot(
        p_mm, v * v, preferred_element_type=jnp.float32)
    m_sc[...] = m_new

    @pl.when(ki == nk - 1)
    def _finalize():
        inv_l = pl.reciprocal(l_sc[...], approx=False)            # (tq, 1)
        mean = accm_sc[...] * inv_l
        ex2 = acc2_sc[...] * inv_l
        std = jnp.sqrt(jnp.maximum(ex2 - mean * mean, 0.0))
        # mean_variance_norm(content): global per-channel stats passed in.
        cnorm = (c_ref[...] - cmean_ref[...]) * cistd_ref[...]
        o_ref[...] = (std * cnorm + mean).astype(o_ref.dtype)


# ----------------------------------------------------------------------------
# Wrapper: layout conversion, XLA pre-projections, padding + mask channel,
# content statistics, VMEM-budgeted pallas_call.
# ----------------------------------------------------------------------------
def adaattn_forward(content, style, content_key, style_key, params,
                    max_sample=256 * 256, matmul_dtype=jnp.bfloat16,
                    tq=512, tk=512):
    """All inputs NCHW float32.  Returns NCHW float32 (same shape as content)."""
    b, C, h, w = content.shape
    _, CK, _, _ = content_key.shape
    _, _, hs, ws = style.shape
    Nq = h * w
    Ns = hs * ws
    assert Ns <= max_sample
    assert Nq > 1, "ddof=1 content variance requires at least 2 spatial positions"
    # TODO(synk): torch.randperm subsampling branch (hs*ws > max_sample) not
    # implemented — it is never taken at these sizes.

    Cp = _round_up(C, 128)
    tq = min(_round_up(tq, 8), _round_up(Nq, 8))
    tk = min(_round_up(tk, 8), _round_up(Ns, 8))

    mm_bytes = jnp.dtype(matmul_dtype).itemsize
    ckp_cons = _round_up(CK + 1, 128)   # conservative (includes mask channel)

    def footprint(tq_, tk_):
        # Double-buffered streamed tiles + persistent f32 scratch.
        stream = (tq_ * ckp_cons * mm_bytes      # F tile
                  + tk_ * ckp_cons * mm_bytes    # G tile
                  + tk_ * Cp * mm_bytes          # V tile
                  + tq_ * Cp * 4                 # content tile (f32)
                  + 2 * Cp * 4                   # cmean / cistd
                  + tq_ * Cp * 4)                # output tile (f32)
        scratch = 2 * tq_ * Cp * 4 + 2 * tq_ * 128 * 4
        return 2 * stream + scratch

    # Auto-shrink tiles to a v7x-safe working-set budget (64 MiB VMEM per TC).
    budget = 40 * 1024 * 1024
    while footprint(tq, tk) > budget and tk > 128:
        tk = max(128, _round_up(tk // 2, 8))
    while footprint(tq, tk) > budget and tq > 128:
        tq = max(128, _round_up(tq // 2, 8))

    NQp = _round_up(Nq, tq)
    NSp = _round_up(Ns, tk)
    nqt = NQp // tq
    nkt = NSp // tk
    needs_mask = NSp > Ns
    # Reserve one spare key channel for the padding mask only if needed.
    CKp = _round_up(CK + (1 if needs_mask else 0), 128)
    mask_ch = CK

    # NCHW -> channels-last flat (B, N, C).
    ck_flat = _nchw_to_flat(content_key)   # (b, Nq, CK)
    sk_flat = _nchw_to_flat(style_key)     # (b, Ns, CK)
    st_flat = _nchw_to_flat(style)         # (b, Ns, C)
    c_flat = _nchw_to_flat(content)        # (b, Nq, C)

    # Global per-channel content statistics (unbiased variance, matches
    # torch.var default) — tiny XLA reductions, passed as (B, 1, C) inputs.
    cmean = jnp.mean(c_flat, axis=1, keepdims=True)
    cvar = jnp.var(c_flat, axis=1, keepdims=True, ddof=1) + EPS
    cistd = 1.0 / jnp.sqrt(cvar)

    # 1x1 convs hoisted out of the flash loop (they were previously recomputed
    # once per query tile per style tile).  bg is free here; kept for exactness.
    F = jnp.einsum("bnc,cd->bnd", ck_flat, params["wf"]) + params["bf"]
    G = jnp.einsum("bnc,cd->bnd", sk_flat, params["wg"]) + params["bg"]
    V = jnp.einsum("bnc,cd->bnd", st_flat, params["wh"]) + params["bh"]

    def pad3(x, n_to, c_to):
        return jnp.pad(x, ((0, 0), (0, n_to - x.shape[1]),
                           (0, c_to - x.shape[2])))

    F_p = pad3(F, NQp, CKp)
    G_p = pad3(G, NSp, CKp)
    V_p = pad3(V, NSp, Cp)
    c_p = pad3(c_flat, NQp, Cp)
    cmean_p = pad3(cmean, 1, Cp)
    cistd_p = pad3(cistd, 1, Cp)

    if needs_mask:
        # Mask-channel trick: F has a constant 1 in the spare channel, padded
        # style rows of G carry a huge negative value there, so padded columns
        # score ~-1e30 and get exactly zero softmax weight — no in-kernel mask.
        F_p = F_p.at[:, :, mask_ch].set(1.0)
        G_p = G_p.at[:, Ns:, mask_ch].set(_MASK_VALUE)

    # Cast streamed MXU operands to matmul_dtype (bf16 by default) in HBM:
    # halves DMA bytes on the style-side tensors that are re-streamed Nq/tq
    # times and removes per-iteration casts.  Accumulation stays f32.
    F_in = F_p.astype(matmul_dtype)
    G_in = G_p.astype(matmul_dtype)
    V_in = V_p.astype(matmul_dtype)

    vmem_limit = int(min(max(1.5 * footprint(tq, tk), 32 * 1024 * 1024),
                         48 * 1024 * 1024))

    kernel = functools.partial(_adaattn_kernel, matmul_dtype=matmul_dtype)

    out_p = pl.pallas_call(
        kernel,
        out_shape=jax.ShapeDtypeStruct((b, NQp, Cp), jnp.float32),
        grid_spec=pltpu.PrefetchScalarGridSpec(
            num_scalar_prefetch=0,
            grid=(b, nqt, nkt),
            in_specs=[
                pl.BlockSpec((None, tq, CKp), lambda bi, qi, ki: (bi, qi, 0)),
                pl.BlockSpec((None, tk, CKp), lambda bi, qi, ki: (bi, ki, 0)),
                pl.BlockSpec((None, tk, Cp), lambda bi, qi, ki: (bi, ki, 0)),
                pl.BlockSpec((None, tq, Cp), lambda bi, qi, ki: (bi, qi, 0)),
                pl.BlockSpec((None, 1, Cp), lambda bi, qi, ki: (bi, 0, 0)),
                pl.BlockSpec((None, 1, Cp), lambda bi, qi, ki: (bi, 0, 0)),
            ],
            out_specs=pl.BlockSpec((None, tq, Cp),
                                   lambda bi, qi, ki: (bi, qi, 0)),
            scratch_shapes=[
                pltpu.VMEM((tq, 1), jnp.float32),    # running max
                pltpu.VMEM((tq, 1), jnp.float32),    # running denom
                pltpu.VMEM((tq, Cp), jnp.float32),   # mean accumulator
                pltpu.VMEM((tq, Cp), jnp.float32),   # E[x^2] accumulator
            ],
        ),
        compiler_params=pltpu.CompilerParams(
            dimension_semantics=("parallel", "parallel", "arbitrary"),
            vmem_limit_bytes=vmem_limit,
        ),
    )(F_in, G_in, V_in, c_p, cmean_p, cistd_p)

    out = out_p[:, :Nq, :C]
    return _flat_to_nchw(out, h, w)


# ----------------------------------------------------------------------------
# Pure-JAX reference (mirrors the PyTorch module) for correctness checks.
# ----------------------------------------------------------------------------
def ref_forward(content, style, content_key, style_key, params):
    def conv1x1(x, w, bias):
        return jnp.einsum("bchw,cd->bdhw", x, w) + bias[None, :, None, None]

    F = conv1x1(content_key, params["wf"], params["bf"])
    G = conv1x1(style_key, params["wg"], params["bg"])
    H = conv1x1(style, params["wh"], params["bh"])
    b, _, hs, ws = G.shape
    Gf = G.reshape(b, -1, hs * ws)
    style_flat = jnp.transpose(H.reshape(b, -1, hs * ws), (0, 2, 1))
    b, _, h, w = F.shape
    Ff = jnp.transpose(F.reshape(b, -1, h * w), (0, 2, 1))
    S = jax.nn.softmax(jnp.einsum("bqc,bcs->bqs", Ff, Gf), axis=-1)
    mean = jnp.einsum("bqs,bsc->bqc", S, style_flat)
    std = jnp.sqrt(jnp.maximum(
        jnp.einsum("bqs,bsc->bqc", S, style_flat ** 2) - mean ** 2, 0.0))
    mean = jnp.transpose(mean.reshape(b, h, w, -1), (0, 3, 1, 2))
    std = jnp.transpose(std.reshape(b, h, w, -1), (0, 3, 1, 2))
    N, C = content.shape[:2]
    cf = content.reshape(N, C, -1)
    cm = cf.mean(axis=2)
    cv = cf.var(axis=2, ddof=1) + EPS
    cn = (content - cm[:, :, None, None]) / jnp.sqrt(cv)[:, :, None, None]
    return std * cn + mean


# ----------------------------------------------------------------------------
if __name__ == "__main__":
    key = jax.random.PRNGKey(0)
    B = 2
    C = 16          # in_planes
    CK = 8          # key_planes
    Hc, Wc = 7, 8   # content spatial -> Nq = 56 (not a tile multiple)
    Hs, Ws = 5, 8   # style spatial   -> Ns = 40 (not a tile multiple)

    ks = jax.random.split(key, 10)
    content = jax.random.normal(ks[0], (B, C, Hc, Wc), jnp.float32)
    style = jax.random.normal(ks[1], (B, C, Hs, Ws), jnp.float32)
    content_key = jax.random.normal(ks[2], (B, CK, Hc, Wc), jnp.float32)
    style_key = jax.random.normal(ks[3], (B, CK, Hs, Ws), jnp.float32)

    # Deterministic parameter init (1x1 conv weights stored as (Cin, Cout)).
    params = {
        "wf": 0.2 * jax.random.normal(ks[4], (CK, CK), jnp.float32),
        "bf": 0.1 * jax.random.normal(ks[5], (CK,), jnp.float32),
        "wg": 0.2 * jax.random.normal(ks[6], (CK, CK), jnp.float32),
        "bg": 0.1 * jax.random.normal(ks[7], (CK,), jnp.float32),
        "wh": 0.2 * jax.random.normal(ks[8], (C, C), jnp.float32),
        "bh": 0.1 * jax.random.normal(ks[9], (C,), jnp.float32),
    }

    ref = ref_forward(content, style, content_key, style_key, params)

    # Small tiles so the multi-tile flash accumulation, Nq/Ns padding and the
    # mask-channel path are all exercised at these toy sizes.
    # f32-operand path: tight tolerance against the reference.
    out_f32 = adaattn_forward(content, style, content_key, style_key, params,
                              tq=16, tk=16, matmul_dtype=jnp.float32)
    out_f32 = jax.block_until_ready(out_f32)
    np.testing.assert_allclose(np.asarray(out_f32), np.asarray(ref),
                               rtol=1e-4, atol=1e-4)
    assert out_f32.shape == content.shape and out_f32.dtype == jnp.float32

    # bf16 MXU-operand path (recommended default on v5e/v6e/v7x; f32
    # accumulation and f32 elementwise everywhere) — tolerance-checked against
    # the reference with bounds appropriate for bf16 operands.
    out_bf16 = adaattn_forward(content, style, content_key, style_key, params,
                               tq=16, tk=16, matmul_dtype=jnp.bfloat16)
    out_bf16 = jax.block_until_ready(out_bf16)
    assert bool(jnp.all(jnp.isfinite(out_bf16)))
    np.testing.assert_allclose(np.asarray(out_bf16), np.asarray(ref),
                               rtol=5e-2, atol=1e-1)

    print("KERNEL_OK")
</pallas_src>

<mosaic_0001>
module attributes {stable_mosaic.version = 11 : i64} {
  func.func @_adaattn_kernel(%arg0: i32, %arg1: i32, %arg2: i32, %arg3: memref<1x16x128xf32, #tpu.memory_space<vmem>>, %arg4: memref<1x16x128xf32, #tpu.memory_space<vmem>>, %arg5: memref<1x16x128xf32, #tpu.memory_space<vmem>>, %arg6: memref<1x16x128xf32, #tpu.memory_space<vmem>>, %arg7: memref<1x1x128xf32, #tpu.memory_space<vmem>>, %arg8: memref<1x1x128xf32, #tpu.memory_space<vmem>>, %arg9: memref<1x16x128xf32, #tpu.memory_space<vmem>>, %arg10: memref<16x1xf32, #tpu.memory_space<vmem>>, %arg11: memref<16x1xf32, #tpu.memory_space<vmem>>, %arg12: memref<16x128xf32, #tpu.memory_space<vmem>>, %arg13: memref<16x128xf32, #tpu.memory_space<vmem>>) attributes {dimension_semantics = [#tpu.dimension_semantics<parallel>, #tpu.dimension_semantics<parallel>, #tpu.dimension_semantics<arbitrary>], iteration_bounds = array<i64: 2, 4, 3>, scalar_prefetch = 0 : i64, scratch_operands = 4 : i64, tpu.core_type = #tpu.core_type<tc>, window_params = [{transform_indices = @transform_0, window_bounds = array<i64: 1, 16, 128>}, {transform_indices = @transform_1, window_bounds = array<i64: 1, 16, 128>}, {transform_indices = @transform_2, window_bounds = array<i64: 1, 16, 128>}, {transform_indices = @transform_3, window_bounds = array<i64: 1, 16, 128>}, {transform_indices = @transform_4, window_bounds = array<i64: 1, 1, 128>}, {transform_indices = @transform_5, window_bounds = array<i64: 1, 1, 128>}, {transform_indices = @transform_6, window_bounds = array<i64: 1, 16, 128>}]} {
    %c0_i32 = arith.constant 0 : i32
    %0 = arith.cmpi eq, %arg2, %c0_i32 : i32
    %1 = arith.extui %0 : i1 to i32
    %c0_i32_0 = arith.constant 0 : i32
    %2 = arith.cmpi ne, %1, %c0_i32_0 : i32
    scf.if %2 {
      %cst_30 = arith.constant 0xFF800000 : f32
      %42 = vector.broadcast %cst_30 : f32 to vector<16x1xf32>
      %c0_31 = arith.constant 0 : index
      %c0_32 = arith.constant 0 : index
      %43 = vector.load %arg10[%c0_31, %c0_32] : memref<16x1xf32, #tpu.memory_space<vmem>>, vector<16x1xf32>
      tpu.vector_store %arg10[%c0_31, %c0_32], %42 {strides = array<i32>} : memref<16x1xf32, #tpu.memory_space<vmem>>, vector<16x1xf32>,
      %cst_33 = arith.constant 0.000000e+00 : f32
      %44 = vector.broadcast %cst_33 : f32 to vector<16x1xf32>
      %c0_34 = arith.constant 0 : index
      %c0_35 = arith.constant 0 : index
      %45 = vector.load %arg11[%c0_34, %c0_35] : memref<16x1xf32, #tpu.memory_space<vmem>>, vector<16x1xf32>
      tpu.vector_store %arg11[%c0_34, %c0_35], %44 {strides = array<i32>} : memref<16x1xf32, #tpu.memory_space<vmem>>, vector<16x1xf32>,
      %cst_36 = arith.constant 0.000000e+00 : f32
      %46 = vector.broadcast %cst_36 : f32 to vector<16x128xf32>
      %c0_37 = arith.constant 0 : index
      %c0_38 = arith.constant 0 : index
      %47 = vector.load %arg12[%c0_37, %c0_38] : memref<16x128xf32, #tpu.memory_space<vmem>>, vector<16x128xf32>
      tpu.vector_store %arg12[%c0_37, %c0_38], %46 {strides = array<i32>} : memref<16x128xf32, #tpu.memory_space<vmem>>, vector<16x128xf32>,
      %cst_39 = arith.constant 0.000000e+00 : f32
      %48 = vector.broadcast %cst_39 : f32 to vector<16x128xf32>
      %c0_40 = arith.constant 0 : index
      %c0_41 = arith.constant 0 : index
      %49 = vector.load %arg13[%c0_40, %c0_41] : memref<16x128xf32, #tpu.memory_space<vmem>>, vector<16x128xf32>
      tpu.vector_store %arg13[%c0_40, %c0_41], %48 {strides = array<i32>} : memref<16x128xf32, #tpu.memory_space<vmem>>, vector<16x128xf32>,
    } else {
    }
    %c0 = arith.constant 0 : index
    %c0_1 = arith.constant 0 : index
    %c0_2 = arith.constant 0 : index
    %3 = vector.load %arg3[%c0, %c0_1, %c0_2] : memref<1x16x128xf32, #tpu.memory_space<vmem>>, vector<1x16x128xf32>
    %4 = vector.shape_cast %3 : vector<1x16x128xf32> to vector<16x128xf32>
    %c0_3 = arith.constant 0 : index
    %c0_4 = arith.constant 0 : index
    %c0_5 = arith.constant 0 : index
    %5 = vector.load %arg4[%c0_3, %c0_4, %c0_5] : memref<1x16x128xf32, #tpu.memory_space<vmem>>, vector<1x16x128xf32>
    %6 = vector.shape_cast %5 : vector<1x16x128xf32> to vector<16x128xf32>
    %cst = arith.constant dense<0.000000e+00> : vector<16x16xf32>
    %7 = tpu.matmul %4, %6, %cst {dimension_numbers = #tpu.dot_dimension_numbers<[1], [1], [0], [0], [0, 0, 1, 0], [], []>} : vector<16x128xf32>, vector<16x128xf32>, vector<16x16xf32> -> vector<16x16xf32>
    %c0_6 = arith.constant 0 : index
    %c0_7 = arith.constant 0 : index
    %8 = vector.load %arg10[%c0_6, %c0_7] : memref<16x1xf32, #tpu.memory_space<vmem>>, vector<16x1xf32>
    %cst_8 = arith.constant dense<0xFF800000> : vector<16xf32>
    %9 = vector.multi_reduction <maximumf>, %7, %cst_8 [1] : vector<16x16xf32> to vector<16xf32>
    %10 = vector.shape_cast %9 : vector<16xf32> to vector<16x1xf32>
    %11 = arith.maximumf %8, %10 : vector<16x1xf32>
    %12 = arith.subf %8, %11 : vector<16x1xf32>
    %13 = math.exp %12 : vector<16x1xf32>
    %14 = vector.broadcast %11 : vector<16x1xf32> to vector<16x16xf32>
    %15 = arith.subf %7, %14 : vector<16x16xf32>
    %16 = math.exp %15 : vector<16x16xf32>
    %c0_9 = arith.constant 0 : index
    %c0_10 = arith.constant 0 : index
    %17 = vector.load %arg11[%c0_9, %c0_10] : memref<16x1xf32, #tpu.memory_space<vmem>>, vector<16x1xf32>
    %18 = arith.mulf %13, %17 : vector<16x1xf32>
    %cst_11 = arith.constant dense<0.000000e+00> : vector<16xf32>
    %19 = vector.multi_reduction <add>, %16, %cst_11 [1] : vector<16x16xf32> to vector<16xf32>
    %20 = vector.shape_cast %19 : vector<16xf32> to vector<16x1xf32>
    %21 = arith.addf %18, %20 : vector<16x1xf32>
    %c0_12 = arith.constant 0 : index
    %c0_13 = arith.constant 0 : index
    %22 = vector.load %arg11[%c0_12, %c0_13] : memref<16x1xf32, #tpu.memory_space<vmem>>, vector<16x1xf32>
    tpu.vector_store %arg11[%c0_12, %c0_13], %21 {strides = array<i32>} : memref<16x1xf32, #tpu.memory_space<vmem>>, vector<16x1xf32>,
    %c0_14 = arith.constant 0 : index
    %c0_15 = arith.constant 0 : index
    %c0_16 = arith.constant 0 : index
    %23 = vector.load %arg5[%c0_14, %c0_15, %c0_16] : memref<1x16x128xf32, #tpu.memory_space<vmem>>, vector<1x16x128xf32>
    %24 = vector.shape_cast %23 : vector<1x16x128xf32> to vector<16x128xf32>
    %c0_17 = arith.constant 0 : index
    %c0_18 = arith.constant 0 : index
    %25 = vector.load %arg12[%c0_17, %c0_18] : memref<16x128xf32, #tpu.memory_space<vmem>>, vector<16x128xf32>
    %26 = vector.broadcast %13 : vector<16x1xf32> to vector<16x128xf32>
    %27 = arith.mulf %26, %25 : vector<16x128xf32>
    %cst_19 = arith.constant dense<0.000000e+00> : vector<16x128xf32>
    %28 = tpu.matmul %16, %24, %cst_19 {dimension_numbers = #tpu.dot_dimension_numbers<[1], [0], [0], [1], [0, 0, 1, 1], [], []>} : vector<16x16xf32>, vector<16x128xf32>, vector<16x128xf32> -> vector<16x128xf32>
    %29 = arith.addf %27, %28 : vector<16x128xf32>
    %c0_20 = arith.constant 0 : index
    %c0_21 = arith.constant 0 : index
    %30 = vector.load %arg12[%c0_20, %c0_21] : memref<16x128xf32, #tpu.memory_space<vmem>>, vector<16x128xf32>
    tpu.vector_store %arg12[%c0_20, %c0_21], %29 {strides = array<i32>} : memref<16x128xf32, #tpu.memory_space<vmem>>, vector<16x128xf32>,
    %c0_22 = arith.constant 0 : index
    %c0_23 = arith.constant 0 : index
    %31 = vector.load %arg13[%c0_22, %c0_23] : memref<16x128xf32, #tpu.memory_space<vmem>>, vector<16x128xf32>
    %32 = vector.broadcast %13 : vector<16x1xf32> to vector<16x128xf32>
    %33 = arith.mulf %32, %31 : vector<16x128xf32>
    %34 = arith.mulf %24, %24 : vector<16x128xf32>
    %cst_24 = arith.constant dense<0.000000e+00> : vector<16x128xf32>
    %35 = tpu.matmul %16, %34, %cst_24 {dimension_numbers = #tpu.dot_dimension_numbers<[1], [0], [0], [1], [0, 0, 1, 1], [], []>} : vector<16x16xf32>, vector<16x128xf32>, vector<16x128xf32> -> vector<16x128xf32>
    %36 = arith.addf %33, %35 : vector<16x128xf32>
    %c0_25 = arith.constant 0 : index
    %c0_26 = arith.constant 0 : index
    %37 = vector.load %arg13[%c0_25, %c0_26] : memref<16x128xf32, #tpu.memory_space<vmem>>, vector<16x128xf32>
    tpu.vector_store %arg13[%c0_25, %c0_26], %36 {strides = array<i32>} : memref<16x128xf32, #tpu.memory_space<vmem>>, vector<16x128xf32>,
    %c0_27 = arith.constant 0 : index
    %c0_28 = arith.constant 0 : index
    %38 = vector.load %arg10[%c0_27, %c0_28] : memref<16x1xf32, #tpu.memory_space<vmem>>, vector<16x1xf32>
    tpu.vector_store %arg10[%c0_27, %c0_28], %11 {strides = array<i32>} : memref<16x1xf32, #tpu.memory_space<vmem>>, vector<16x1xf32>,
    %c2_i32 = arith.constant 2 : i32
    %39 = arith.cmpi eq, %arg2, %c2_i32 : i32
    %40 = arith.extui %39 : i1 to i32
    %c0_i32_29 = arith.constant 0 : i32
    %41 = arith.cmpi ne, %40, %c0_i32_29 : i32
    scf.if %41 {
      %c0_30 = arith.constant 0 : index
      %c0_31 = arith.constant 0 : index
      %42 = vector.load %arg11[%c0_30, %c0_31] : memref<16x1xf32, #tpu.memory_space<vmem>>, vector<16x1xf32>
      %43 = tpu.reciprocal %42 : vector<16x1xf32> -> vector<16x1xf32>
      %c0_32 = arith.constant 0 : index
      %c0_33 = arith.constant 0 : index
      %44 = vector.load %arg12[%c0_32, %c0_33] : memref<16x128xf32, #tpu.memory_space<vmem>>, vector<16x128xf32>
      %45 = vector.broadcast %43 : vector<16x1xf32> to vector<16x128xf32>
      %46 = arith.mulf %44, %45 : vector<16x128xf32>
      %c0_34 = arith.constant 0 : index
      %c0_35 = arith.constant 0 : index
      %47 = vector.load %arg13[%c0_34, %c0_35] : memref<16x128xf32, #tpu.memory_space<vmem>>, vector<16x128xf32>
      %48 = vector.broadcast %43 : vector<16x1xf32> to vector<16x128xf32>
      %49 = arith.mulf %47, %48 : vector<16x128xf32>
      %50 = arith.mulf %46, %46 : vector<16x128xf32>
      %51 = arith.subf %49, %50 : vector<16x128xf32>
      %cst_36 = arith.constant 0.000000e+00 : f32
      %52 = vector.broadcast %cst_36 : f32 to vector<16x128xf32>
      %53 = arith.maximumf %51, %52 : vector<16x128xf32>
      %54 = math.sqrt %53 : vector<16x128xf32>
      %c0_37 = arith.constant 0 : index
      %c0_38 = arith.constant 0 : index
      %c0_39 = arith.constant 0 : index
      %55 = vector.load %arg6[%c0_37, %c0_38, %c0_39] : memref<1x16x128xf32, #tpu.memory_space<vmem>>, vector<1x16x128xf32>
      %56 = vector.shape_cast %55 : vector<1x16x128xf32> to vector<16x128xf32>
      %c0_40 = arith.constant 0 : index
      %c0_41 = arith.constant 0 : index
      %c0_42 = arith.constant 0 : index
      %57 = vector.load %arg7[%c0_40, %c0_41, %c0_42] : memref<1x1x128xf32, #tpu.memory_space<vmem>>, vector<1x1x128xf32>
      %58 = vector.shape_cast %57 : vector<1x1x128xf32> to vector<1x128xf32>
      %59 = vector.broadcast %58 : vector<1x128xf32> to vector<16x128xf32>
      %60 = arith.subf %56, %59 : vector<16x128xf32>
      %c0_43 = arith.constant 0 : index
      %c0_44 = arith.constant 0 : index
      %c0_45 = arith.constant 0 : index
      %61 = vector.load %arg8[%c0_43, %c0_44, %c0_45] : memref<1x1x128xf32, #tpu.memory_space<vmem>>, vector<1x1x128xf32>
      %62 = vector.shape_cast %61 : vector<1x1x128xf32> to vector<1x128xf32>
      %63 = vector.broadcast %62 : vector<1x128xf32> to vector<16x128xf32>
      %64 = arith.mulf %60, %63 : vector<16x128xf32>
      %65 = arith.mulf %54, %64 : vector<16x128xf32>
      %66 = arith.addf %65, %46 : vector<16x128xf32>
      %c0_46 = arith.constant 0 : index
      %c0_47 = arith.constant 0 : index
      %c0_48 = arith.constant 0 : index
      %67 = vector.load %arg9[%c0_46, %c0_47, %c0_48] : memref<1x16x128xf32, #tpu.memory_space<vmem>>, vector<1x16x128xf32>
      %68 = vector.shape_cast %67 : vector<1x16x128xf32> to vector<16x128xf32>
      %69 = vector.shape_cast %66 : vector<16x128xf32> to vector<1x16x128xf32>
      tpu.vector_store %arg9[%c0_46, %c0_47, %c0_48], %69 {strides = array<i32>} : memref<1x16x128xf32, #tpu.memory_space<vmem>>, vector<1x16x128xf32>,
    } else {
    }
    return
  }
  func.func @transform_0(%arg0: i32, %arg1: i32, %arg2: i32) -> (i32, i32, i32) {
    %c0_i32 = arith.constant 0 : i32
    %c0_i32_0 = arith.constant 0 : i32
    return %arg0, %arg1, %c0_i32 : i32, i32, i32
  }
  func.func @transform_1(%arg0: i32, %arg1: i32, %arg2: i32) -> (i32, i32, i32) {
    %c0_i32 = arith.constant 0 : i32
    %c0_i32_0 = arith.constant 0 : i32
    return %arg0, %arg2, %c0_i32 : i32, i32, i32
  }
  func.func @transform_2(%arg0: i32, %arg1: i32, %arg2: i32) -> (i32, i32, i32) {
    %c0_i32 = arith.constant 0 : i32
    %c0_i32_0 = arith.constant 0 : i32
    return %arg0, %arg2, %c0_i32 : i32, i32, i32
  }
  func.func @transform_3(%arg0: i32, %arg1: i32, %arg2: i32) -> (i32, i32, i32) {
    %c0_i32 = arith.constant 0 : i32
    %c0_i32_0 = arith.constant 0 : i32
    return %arg0, %arg1, %c0_i32 : i32, i32, i32
  }
  func.func @transform_4(%arg0: i32, %arg1: i32, %arg2: i32) -> (i32, i32, i32) {
    %c0_i32 = arith.constant 0 : i32
    %c0_i32_0 = arith.constant 0 : i32
    %c0_i32_1 = arith.constant 0 : i32
    return %arg0, %c0_i32, %c0_i32_0 : i32, i32, i32
  }
  func.func @transform_5(%arg0: i32, %arg1: i32, %arg2: i32) -> (i32, i32, i32) {
    %c0_i32 = arith.constant 0 : i32
    %c0_i32_0 = arith.constant 0 : i32
    %c0_i32_1 = arith.constant 0 : i32
    return %arg0, %c0_i32, %c0_i32_0 : i32, i32, i32
  }
  func.func @transform_6(%arg0: i32, %arg1: i32, %arg2: i32) -> (i32, i32, i32) {
    %c0_i32 = arith.constant 0 : i32
    %c0_i32_0 = arith.constant 0 : i32
    return %arg0, %arg1, %c0_i32 : i32, i32, i32
  }
}

</mosaic_0001>

<bundles_post_ra>
// kernel: tpu_custom_call.1
= control target key start
LH: loop header
LB: loop body
LE: loop exit
PB: predicated region body
PF: predicated region fallthrough
CT: control target
= control target key end

     0   :  { %s2132_s0 = inlined_call_operand.hbm [shape: f32[2,64,128], index: 0, kind: input, shape index: {}]   ;;  %s2133_s1 = inlined_call_operand.hbm [shape: f32[2,48,128], index: 1, kind: input, shape index: {}]   ;;  %s2134_s2 = inlined_call_operand.hbm [shape: f32[2,48,128], index: 2, kind: input, shape index: {}]   ;;  %s2135_s3 = inlined_call_operand.hbm [shape: f32[2,64,128], index: 3, kind: input, shape index: {}]   ;;  %s2136_s4 = inlined_call_operand.vmem [shape: f32[2,1,128], index: 4, kind: input, shape index: {}]   ;;  %s2137_s5 = inlined_call_operand.vmem [shape: f32[2,1,128], index: 5, kind: input, shape index: {}]   ;;  %s2138_s6 = inlined_call_operand.hbm [shape: f32[2,64,128], index: 6, kind: output, shape index: {}]  }
   0x1   :  { %2165 = sst [smem:[#allocation33_spill]] %s2133_s1 }
   0x2   :  { %2166 = sst [smem:[#allocation34_spill]] %s2136_s4 }
   0x3   :  { %2167 = sst [smem:[#allocation35_spill]] %s2137_s5 }
   0x4   :  { %2168 = sst [smem:[#allocation36_spill]] %s2138_s6 }
   0x5   :  { %11 = vsyncpa [#allocation7], 0 }
   0x6   :  { %13 = vsyncpa [#allocation7 + $0x1], 0 }
   0x7   :  { %14 = vsyncpa [#allocation10], 0 }
   0x8   :  { %16 = vsyncpa [#allocation10 + $0x1], 0 }
   0x9   :  { %17 = vsyncpa [#allocation13], 0 }
   0xa   :  { %19 = vsyncpa [#allocation13 + $0x1], 0 }
   0xb   :  { %20 = vsyncpa [#allocation8], 0 }
   0xc   :  { %22 = vsyncpa [#allocation8 + $0x1], 0  ;;  %s1623_s21 = smov 0   ;;  %s1625_s22 = smov 0  }
   0xd   :  { %s1627_s23 = smov 0   ;;  %s1629_s24 = smov 0  }
   0xe   :  { %s1631_s25 = smov 0   ;;  %s1633_s26 = smov 0  }
   0xf   :  { %s1635_s27 = smov 0   ;;  %s1637_s28 = smov 0  }
  0x10   :  { %s1639_s29 = smov 0   ;;  %s1641_s30 = smov 0  }
  0x11   :  { %s1643_s7 = smov 0   ;;  %s1645_s8 = smov 0  }
  0x12   :  { %s1647_s9 = smov 0  }
  0x13 LB: > { %2169 = sst [smem:[#allocation19_spill]] %s1529_s22  ;;  %s1687_s10 = sadd.s32 4294967295, %s1573_s9   ;;  %s1573_s9 = sphi %s1647_s9, %s28_s9   ;;  %s1569_s8 = sphi %s1645_s8, %s2240_s8   ;;  %s1565_s7 = sphi %s1643_s7, %s2228_s7   ;;  %s1561_s30 = sphi %s1641_s30, %s2239_s30   ;;  %s1557_s29 = sphi %s1639_s29, %s2238_s29   ;;  %s1553_s28 = sphi %s1637_s28, %s2237_s28   ;;  %s1549_s27 = sphi %s1635_s27, %s2236_s27   ;;  %s1545_s26 = sphi %s1633_s26, %s2235_s26   ;;  %s1541_s25 = sphi %s1631_s25, %s2234_s25   ;;  %s1537_s24 = sphi %s1629_s24, %s2233_s24   ;;  %s1533_s23 = sphi %s1627_s23, %s2232_s23   ;;  %s1529_s22 = sphi %s1625_s22, %s2231_s22   ;;  %s1525_s21 = sphi %s1623_s21, %s2224_s21  }
  0x14   : > { %2170 = sst [smem:[#allocation20_spill]] %s1537_s24  ;;  %s40_s11 = sadd.s32 1, %s1561_s30 }
  0x15   : > { %2171 = sst [smem:[#allocation21_spill]] %s1549_s27  ;;  %p1690_p0 = scmp.ge.s32.totalorder %s40_s11, 3 }
  0x16   : > { %2172 = sst [smem:[#allocation22_spill]] %s1553_s28  ;;  %p2146_p1 = scmp.eq.s32.totalorder %s1573_s9, 0 }
  0x17   : > { %2173 = sst [smem:[#allocation23_spill]] %s1557_s29  ;;  %p2145_p2 = scmp.eq.s32.totalorder %s1687_s10, 0 }
  0x18   : > { %2174 = sst [smem:[#allocation24_spill]] %s1565_s7  ;;  %s2242_s11 = smov (%p1690_p0, %s40_s11), 0 }
  0x19   : > { %2175 = sst [smem:[#allocation25_spill]] %s1687_s10  ;;  %p91_p3 = scmp.ne.s32.totalorder %s1533_s23, %s1529_s22 }
  0x1a   : > { %2177 = sst [smem:[#allocation26_spill]] %s2242_s11  ;;  %p97_p4 = scmp.ne.s32.totalorder %s1529_s22, %s1525_s21 }
  0x1b   : > { %p93_p5 = por %p91_p3, %p2146_p1  ;;  %p2144_p7 = scmp.lt.s32.totalorder %s1573_s9, 24 }
  0x1c   : > { %p1711_p6 = por %p97_p4, %p2145_p2  ;;  %s280_s17 = sand.u32 1, %s1573_s9  }
  0x1d   : > { %s282_s18 = sand.u32 1, %s1533_s23   ;;  %s1071_s20 = sshll.u32 %s1561_s30, 1 }
  0x1e   : > { %s2178_s16 = scalar_select %p1711_p6, 1, 0 }
  0x1f   : > { %s1718_s19 = sshll.u32 %s282_s18, 4  ;;  %s1145_s13 = smul.u32 6, %s1569_s8 }
  0x20   : > { %2179 = sst [smem:[#allocation27_spill]] %s2178_s16  ;;  %s284_s6 = scalar_lea.vmem [#allocation9], %s1718_s19 }
  0x21   : > { %s293_s14 = sshll.u32 %s284_s6, 4  ;;  %p1727_p8 = pnand %p2144_p7, %p93_p5  ;;  %s1723_s14 = int_to_ptr.vmem [resolvable:$true] %s293_s14 }
  0x22   : > { %s290_s15 = sadd.s32 %s1145_s13, %s1071_s20  ;;  %s2181_s1 = sld [smem:[#allocation33_spill]] }
  0x23   : > { %s1072_s28 = sshll.u32 %s290_s15, 7  ;;  %s1741_s16 = scalar_lea.sflag [#allocation10], %s280_s17 }
  0x24   : > { %s1739_s6 = scalar_lea.hbm %s2134_s2, %s1072_s28  ;;  %p1309_p10 = pneg %p1727_p8 }
  0x28   : > { %s1734_s18 = scalar_lea.hbm %s2181_s1, %s1072_s28  ;;  %s1312_s4 = scalar_lea.hbm %s2181_s1, 1536 }
  0x29   : > { %s1307_s22 = scalar_lea.hbm %s1734_s18, 256  ;;  %p1313_p13 = scmp.lt.u32.totalorder %s1734_s18, %s2181_s1 }
  0x2a   : > { %p1308_p9 = scmp.ne.s32.totalorder %s1734_s18, %s1307_s22  ;;  %p1314_p3 = scmp.lt.u32.totalorder %s1312_s4, %s1307_s22 }
  0x2b   : > { %p1316_p5 = scmp.lt.u32.totalorder %s1307_s22, %s1734_s18 }
  0x2c   : > { %p1310_p11 = pnand %p1309_p10, %p1308_p9  ;;  %p1315_p4 = por %p1314_p3, %p1313_p13 }
  0x2e   : > { %p1311_p12 = pneg %p1310_p11  ;;  %p1317_p7 = por %p1316_p5, %p1315_p4 }
  0x30   : > { %p1318_p2 = pnand %p1317_p7, %p1311_p12 }
  0x32   : > { %1321 = shalt.err (!%p1318_p2)
}
  0x33   : > { %s1322_s28 = scalar_lea.vmem %s1723_s14, 256  ;;  %s1575_s15 = smov [#allocation9]  }
  0x34   : > { %p1323_p9 = scmp.ne.s32.totalorder %s1723_s14, %s1322_s28  ;;  %s1327_s17 = sshll.u32 %s1575_s15, 4  ;;  %s1328_s17 = int_to_ptr.vmem [resolvable:$false] %s1327_s17 }
  0x35   : > { %s1329_s20 = scalar_lea.vmem %s1328_s17, 512  ;;  %p1330_p6 = scmp.lt.s32.totalorder %s1723_s14, %s1328_s17 }
  0x36   : > { %p1325_p11 = pnand %p1323_p9, %p1309_p10  ;;  %p1331_p13 = scmp.lt.s32.totalorder %s1329_s20, %s1322_s28 }
  0x38   : > { %p1326_p1 = pneg %p1325_p11  ;;  %p1332_p3 = por %p1331_p13, %p1330_p6 }
  0x3a   : > { %p1333_p4 = pnand %p1332_p3, %p1326_p1 }
  0x3c   : > { %1336 = shalt.err (!%p1333_p4)
}
  0x3d   : > { %s2148_s22 = smov 128   ;;  %s2150_s5 = smov 8  }
  0x3e   : > { %1163 = dma.hbm_to_vmem [thread:$0]  (!%p1727_p8), %s1734_s18, 256, %s1723_s14, %s1741_s16, %s2148_s22, %s2148_s22, %s2150_s5  }
  0x3f   : > { %s307_s27 = scalar_lea.vmem [#allocation11], %s1718_s19  ;;  %p1080_p1 = scmp.ge.s32.totalorder %s1573_s9, 1 }
  0x40   : > { %s316_s4 = sshll.u32 %s307_s27, 4  ;;  %p359_p2 = scmp.lt.s32.totalorder %s1573_s9, 25  ;;  %s1774_s4 = int_to_ptr.vmem [resolvable:$true] %s316_s4 }
  0x41   : > { %s1063_s13 = sadd.s32 4294967294, %s1573_s9   ;;  %s43_s28 = sadd.s32 1, %s1565_s7 }
  0x42   : > { %p1777_p6 = pnand %p1080_p1, %p359_p2  ;;  %s56_s14 = sadd.s32 1, %s1545_s26 }
  0x43   : > { %s2244_s28 = smov (!%p1690_p0, %s43_s28), %s1565_s7  ;;  %p63_p7 = scmp.ne.s32.totalorder %s1545_s26, %s1541_s25 }
  0x44   : > { %s2182_s29 = scalar_select %p1777_p6, 1, 0 }
  0x45   : > { %p69_p12 = scmp.ne.s32.totalorder %s1541_s25, %s1537_s24  ;;  %p45_p5 = scmp.ge.s32.totalorder %s2244_s28, 4 }
  0x46   : > { %p231_p9 = scmp.eq.s32.totalorder %s1687_s10, 23  ;;  %p2183_p11 = scmp.eq.s32.totalorder %s1573_s9, 0 }
  0x47   : > { %p2185_p3 = scmp.eq.s32.totalorder %s1687_s10, 0  ;;  %s2246_s28 = smov (%p45_p5, %s2244_s28), 0 }
  0x48   : > { %p1794_p13 = por %p2183_p11, %p63_p7  ;;  %2188 = sst [smem:[#allocation29_spill]] %s2246_s28 }
  0x49   : > { %p1803_p4 = por %p2185_p3, %p69_p12  ;;  %s2189_s12 = sadd.s32 1, %s1569_s8 }
  0x4a   : > { %s2248_s12 = smov (!%p45_p5, %s2189_s12), %s1569_s8  ;;  %s52_s15 = ssub.s32 %s1565_s7, %s2246_s28 }
  0x4b   : > { %s2186_s18 = scalar_select %p1803_p4, 1, 0 }
  0x4c   : > { %p1814_p0 = por %p231_p9, %p63_p7  ;;  %p49_p1 = scmp.ge.s32.totalorder %s2248_s12, 2 }
  0x4d   : > { %2187 = sst [smem:[#allocation28_spill]] %s2186_s18  ;;  %p237_p2 = scmp.eq.s32.totalorder %s1063_s13, 23 }
  0x4e   : > { %s2190_s17 = scalar_select %p1814_p0, 1, 0 }
  0x4f   : > { %s1819_s20 = sand.u32 1, %s1545_s26   ;;  %s1067_s27 = sshll.u32 %s1565_s7, 1 }
  0x50   : > { %2191 = sst [smem:[#allocation30_spill]] %s2190_s17  ;;  %s2250_s12 = smov (%p49_p1, %s2248_s12), 0 }
  0x51   : > { %2192 = sst [smem:[#allocation31_spill]] %s2250_s12  ;;  %p1827_p5 = por %p237_p2, %p69_p12 }
  0x52   : > { %s51_s5 = ssub.s32 %s1569_s8, %s2250_s12  ;;  %s1066_s1 = sshll.u32 %s1819_s20, 4 }
  0x53   : > { %s2193_s22 = scalar_select %p1827_p5, 1, 0 }
  0x54   : > { %s53_s13 = sor.u32 %s52_s15, %s51_s5  ;;  %s2195_s28 = ssub.s32 %s1561_s30, %s2242_s11 }
  0x55   : > { %2194 = sst [smem:[#allocation32_spill]] %s2193_s22  ;;  %s81_s17 = sor.u32 %s2195_s28, %s51_s5 }
  0x56   : > { %p54_p7 = scmp.eq.s32.totalorder %s53_s13, 0  ;;  %p82_p9 = scmp.eq.s32.totalorder %s81_s17, 0 }
  0x57   : > { %s1068_s7 = sshll.u32 %s1569_s8, 3  ;;  %s2196_s10 = sadd.s32 1, %s1533_s23 }
  0x58   : > { %s1839_s24 = scalar_select %p54_p7, %s1545_s26, %s56_s14  }
  0x59   : > { %s1844_s18 = scalar_select %p82_p9, %s1533_s23, %s2196_s10  }
  0x5a   : > { %s1846_s22 = sadd.s32 %s1068_s7, %s1067_s27  ;;  %s261_s12 = scalar_lea.vmem [#allocation6], %s1066_s1 }
  0x5b   : > { %s270_s15 = sshll.u32 %s261_s12, 4  ;;  %s1069_s11 = sshll.u32 %s1846_s22, 7  ;;  %s1851_s15 = int_to_ptr.vmem [resolvable:$true] %s270_s15 }
  0x5c   : > { %s1858_s14 = scalar_lea.hbm %s2132_s0, %s1069_s11  ;;  %p2197_p12 = scmp.lt.s32.totalorder %s1573_s9, 24 }
  0x5d   : > { %s1337_s7 = scalar_lea.hbm %s1739_s6, 256  ;;  %s1342_s27 = scalar_lea.hbm %s2134_s2, 1536 }
  0x5e   : > { %p1864_p11 = pnand %p2197_p12, %p1794_p13  ;;  %p1338_p3 = scmp.ne.s32.totalorder %s1739_s6, %s1337_s7 }
  0x5f   : > { %p1343_p7 = scmp.lt.u32.totalorder %s1739_s6, %s2134_s2  ;;  %p1344_p9 = scmp.lt.u32.totalorder %s1342_s27, %s1337_s7 }
  0x60   : > { %p1340_p1 = pnand %p1338_p3, %p1309_p10  ;;  %p1346_p13 = scmp.lt.u32.totalorder %s1337_s7, %s1739_s6 }
  0x61   : > { %p1345_p5 = por %p1344_p9, %p1343_p7 }
  0x62   : > { %p1341_p2 = pneg %p1340_p1 }
  0x63   : > { %p1347_p12 = por %p1346_p13, %p1345_p5 }
  0x65   : > { %p1348_p0 = pnand %p1347_p12, %p1341_p2 }
  0x67   : > { %1351 = shalt.err (!%p1348_p0)
}
  0x68   : > { %s1352_s19 = scalar_lea.vmem %s1774_s4, 256  ;;  %s1578_s28 = smov [#allocation11]  }
  0x69   : > { %p1353_p3 = scmp.ne.s32.totalorder %s1774_s4, %s1352_s19  ;;  %s1357_s12 = sshll.u32 %s1578_s28, 4  ;;  %s1358_s12 = int_to_ptr.vmem [resolvable:$false] %s1357_s12 }
  0x6a   : > { %s1359_s17 = scalar_lea.vmem %s1358_s12, 512  ;;  %p1360_p6 = scmp.lt.s32.totalorder %s1774_s4, %s1358_s12 }
  0x6b   : > { %p1355_p1 = pnand %p1353_p3, %p1309_p10  ;;  %p1361_p7 = scmp.lt.s32.totalorder %s1359_s17, %s1352_s19 }
  0x6d   : > { %p1356_p4 = pneg %p1355_p1  ;;  %p1362_p9 = por %p1361_p7, %p1360_p6 }
  0x6f   : > { %p1363_p5 = pnand %p1362_p9, %p1356_p4 }
  0x71   : > { %1366 = shalt.err (!%p1363_p5)
}
  0x72   : > { %s2199_s7 = smov 8   ;;  %s2200_s27 = smov 128  }
  0x73   : > { %1166 = dma.hbm_to_vmem [thread:$0]  (!%p1727_p8), %s1739_s6, 256, %s1774_s4, %s1741_s16, %s2200_s27, %s2200_s27, %s2199_s7  }
  0x74   : > { %s258_s13 = scalar_lea.sflag [#allocation7], %s1819_s20  ;;  %s1367_s5 = scalar_lea.hbm %s1858_s14, 256 }
  0x75   : > { %p1368_p10 = scmp.ne.s32.totalorder %s1858_s14, %s1367_s5  ;;  %p1369_p6 = pneg %p1864_p11 }
  0x76   : > { %s1372_s28 = scalar_lea.hbm %s2132_s0, 2048  ;;  %p1373_p2 = scmp.lt.u32.totalorder %s1858_s14, %s2132_s0 }
  0x77   : > { %p1370_p4 = pnand %p1369_p6, %p1368_p10  ;;  %p1374_p13 = scmp.lt.u32.totalorder %s1372_s28, %s1367_s5 }
  0x78   : > { %p1376_p8 = scmp.lt.u32.totalorder %s1367_s5, %s1858_s14 }
  0x79   : > { %p1371_p0 = pneg %p1370_p4  ;;  %p1375_p12 = por %p1374_p13, %p1373_p2 }
  0x7b   : > { %p1377_p3 = por %p1376_p8, %p1375_p12 }
  0x7d   : > { %p1378_p1 = pnand %p1377_p3, %p1371_p0 }
  0x7f   : > { %1381 = shalt.err (!%p1378_p1)
}
  0x80   : > { %s1382_s16 = scalar_lea.vmem %s1851_s15, 256  ;;  %s1579_s6 = smov [#allocation6]  }
  0x81   : > { %p1383_p7 = scmp.ne.s32.totalorder %s1851_s15, %s1382_s16  ;;  %s1387_s4 = sshll.u32 %s1579_s6, 4  ;;  %s1388_s4 = int_to_ptr.vmem [resolvable:$false] %s1387_s4 }
  0x82   : > { %s1389_s21 = scalar_lea.vmem %s1388_s4, 512  ;;  %p1390_p10 = scmp.lt.s32.totalorder %s1851_s15, %s1388_s4 }
  0x83   : > { %p1385_p9 = pnand %p1383_p7, %p1369_p6  ;;  %p1391_p4 = scmp.lt.s32.totalorder %s1389_s21, %s1382_s16 }
  0x85   : > { %p1386_p5 = pneg %p1385_p9  ;;  %p1392_p2 = por %p1391_p4, %p1390_p10 }
  0x87   : > { %p1393_p13 = pnand %p1392_p2, %p1386_p5 }
  0x89   : > { %1396 = shalt.err (!%p1393_p13)
}
  0x8a   : > { %1160 = dma.hbm_to_vmem [thread:$0]  (!%p1864_p11), %s1858_s14, 256, %s1851_s15, %s258_s13, %s2200_s27, %s2200_s27, %s2199_s7  }
  0x8b   : > { %s1931_s28 = scalar_lea.hbm %s2135_s3, %s1069_s11  ;;  %s330_s12 = scalar_lea.vmem [#allocation12], %s1066_s1 }
  0x8c   : > { %s339_s17 = sshll.u32 %s330_s12, 4  ;;  %s327_s16 = scalar_lea.sflag [#allocation13], %s1819_s20  ;;  %s1935_s17 = int_to_ptr.vmem [resolvable:$true] %s339_s17 }
  0x8d   : > { %s1397_s6 = scalar_lea.hbm %s1931_s28, 256  ;;  %s1402_s11 = scalar_lea.hbm %s2135_s3, 2048 }
  0x8e   : > { %p1398_p0 = scmp.ne.s32.totalorder %s1931_s28, %s1397_s6  ;;  %p1403_p3 = scmp.lt.u32.totalorder %s1931_s28, %s2135_s3 }
  0x8f   : > { %p1404_p1 = scmp.lt.u32.totalorder %s1402_s11, %s1397_s6  ;;  %p1406_p9 = scmp.lt.u32.totalorder %s1397_s6, %s1931_s28 }
  0x90   : > { %p1400_p12 = pnand %p1398_p0, %p1369_p6 }
  0x91   : > { %p1405_p7 = por %p1404_p1, %p1403_p3 }
  0x92   : > { %p1401_p8 = pneg %p1400_p12 }
  0x93   : > { %p1407_p5 = por %p1406_p9, %p1405_p7 }
  0x95   : > { %p1408_p10 = pnand %p1407_p5, %p1401_p8 }
  0x97   : > { %1411 = shalt.err (!%p1408_p10)
}
  0x98   : > { %s1412_s1 = scalar_lea.vmem %s1935_s17, 256  ;;  %s1580_s4 = smov [#allocation12]  }
  0x99   : > { %p1413_p4 = scmp.ne.s32.totalorder %s1935_s17, %s1412_s1  ;;  %s1417_s21 = sshll.u32 %s1580_s4, 4  ;;  %s1418_s21 = int_to_ptr.vmem [resolvable:$false] %s1417_s21 }
  0x9a   : > { %s1419_s5 = scalar_lea.vmem %s1418_s21, 512  ;;  %p1420_p0 = scmp.lt.s32.totalorder %s1935_s17, %s1418_s21 }
  0x9b   : > { %p1415_p2 = pnand %p1413_p4, %p1369_p6  ;;  %p1421_p12 = scmp.lt.s32.totalorder %s1419_s5, %s1412_s1 }
  0x9d   : > { %p1416_p13 = pneg %p1415_p2  ;;  %p1422_p3 = por %p1421_p12, %p1420_p0 }
  0x9f   : > { %p1423_p1 = pnand %p1422_p3, %p1416_p13 }
  0xa1   : > { %1426 = shalt.err (!%p1423_p1)
}
  0xa2   : > { %1169 = dma.hbm_to_vmem [thread:$0]  (!%p1864_p11), %s1931_s28, 256, %s1935_s17, %s327_s16, %s2200_s27, %s2200_s27, %s2199_s7  }
  0xa3   : > { %p2201_p6 = scmp.ne.s32.totalorder %s2182_s29, 0 }
  0xa4   : > { %s2202_s19 = sld [smem:[#allocation28_spill]] (!%p2201_p6)  ;;  %s1969_s12 = sand.u32 (!%p2201_p6), 1, %s1541_s25  }
  0xa5   : > { %363 = sbr.rel (%p2201_p6) target bundleno = 1070 (0x42e), region = 44  ;;  %s1972_s6 = sshll.u32 (!%p2201_p6), %s1969_s12, 4 }
  0xa6   : > { %s366_s10 = scalar_lea.sflag (!%p2201_p6), [#allocation7], %s1969_s12  ;;  %s369_s22 = scalar_lea.vmem (!%p2201_p6), [#allocation6], %s1972_s6 }
  0xaa   : > { %p2203_p8 = scmp.ne.s32.totalorder (!%p2201_p6), %s2202_s19, 0 }
  0xac   : > { %1508 = dma.done.wait (%p2203_p8), %s366_s10, 256  }
  0xad   : > { %1510 = vsyncadd (%p2203_p8), %s366_s10, 4294967040  ;;  %s2204_s20 = sld [smem:[#allocation25_spill]]  ;;  %s2205_s7 = sld [smem:[#allocation19_spill]] }
  0xae   : > { %s2206_s29 = sld [smem:[#allocation27_spill]] }
  0xb3   : > { %s374_s27 = sand.u32 1, %s2204_s20   ;;  %s376_s28 = sand.u32 1, %s2205_s7  }
  0xb4   : > { %s1982_s17 = sshll.u32 %s376_s28, 4  ;;  %s375_s16 = scalar_lea.sflag [#allocation10], %s374_s27 }
  0xb5   : > { %s378_s15 = scalar_lea.vmem [#allocation9], %s1982_s17  ;;  %p2207_p11 = scmp.ne.s32.totalorder %s2206_s29, 0 }
  0xb7   : > { %1512 = dma.done.wait (%p2207_p11), %s375_s16, 512  }
  0xb8   : > { %1514 = vsyncadd (%p2207_p11), %s375_s16, 4294966784  ;;  %s387_s11 = scalar_lea.vmem [#allocation11], %s1982_s17  ;;  %s393_s14 = scalar_lea.sflag [#allocation13], %s1969_s12 }
  0xb9   : > { %s396_s13 = scalar_lea.vmem [#allocation12], %s1972_s6 }
  0xba   : > { %1516 = dma.done.wait (%p2203_p8), %s393_s14, 256  }
  0xbb   : > { %1518 = vsyncadd (%p2203_p8), %s393_s14, 4294967040  ;;  %s2208_s1 = sld [smem:[#allocation23_spill]]  ;;  %s2209_s5 = sld [smem:[#allocation34_spill]] }
  0xbc   : > { %s2210_s29 = sld [smem:[#allocation35_spill]]  ;;  %s2009_s28 = scalar_lea.vmem [#allocation14], %s1972_s6 }
  0xbd   : > { %s2211_s19 = sld [smem:[#allocation21_spill]] }
  0xc1   : > { %p450_p7 = scmp.lt.s32.totalorder %s2208_s1, 1 }
  0xc3   : > { %s2252_s1 = smov (!%p450_p7, %s2208_s1), 1  ;;  %p1086_p9 = scmp.ne.s32.totalorder %s2211_s19, 0 }
  0xc4   : > { %s452_s10 = scalar_lea.vmem %s2209_s5, %s2252_s1  ;;  %s455_s27 = scalar_lea.vmem %s2210_s29, %s2252_s1  ;;  %vm461_vm0 = vcmask (!%p1086_p9), 7168   ;;  %v1581_v0 = vmov (!%p1086_p9), -inf   ;;  %v1582_v1 = vmov (!%p1086_p9), 0.0  }
  0xc5   : > { %460 = sbr.rel (%p1086_p9) target bundleno = 204 (0xcc), region = 64  ;;  %462 = vst.msk [vmem:[#allocation2] sm:$0xff] (!%p1086_p9), %vm461_vm0, %v1581_v0  ;;  %463 = vst.msk [vmem:[#allocation2 + $0x8] sm:$0xff] (!%p1086_p9), %vm461_vm0, %v1581_v0 }
  0xc6   : > { %464 = vst.msk [vmem:[#allocation3] sm:$0xff] (!%p1086_p9), %vm461_vm0, %v1582_v1  ;;  %465 = vst.msk [vmem:[#allocation3 + $0x8] sm:$0xff] (!%p1086_p9), %vm461_vm0, %v1582_v1 }
  0xc7   : > { %466 = vst [vmem:[#allocation4] sm:$0xff] (!%p1086_p9), %v1582_v1  ;;  %467 = vst [vmem:[#allocation4 + $0x8] sm:$0xff] (!%p1086_p9), %v1582_v1 }
  0xc8   : > { %468 = vst [vmem:[#allocation5] sm:$0xff] (!%p1086_p9), %v1582_v1  ;;  %469 = vst [vmem:[#allocation5 + $0x8] sm:$0xff] (!%p1086_p9), %v1582_v1 }
  0xcc PF: > { %v472_v2 = vld [vmem:[%s378_s15] sm:$0xff]  ;;  %v473_v3 = vld [vmem:[%s378_s15 + $0x8] sm:$0xff]  ;;  %vm551_vm1 = vcmask 130048   ;;  %v1583_v11 = vmov 0   ;;  %vm594_vm2 = vcmask 7168  }
  0xcd   : > { %v470_v4 = vld [vmem:[%s369_s22] sm:$0xff]  ;;  %v1133_v5 = vpack.c.bf16 %v473_v3, %v472_v2  ;;  %v471_v6 = vld [vmem:[%s369_s22 + $0x8] sm:$0xff]  ;;  %1288 = vset.pattern.permute.xlu1 %v1583_v11  ;;  %1289 = vset.pattern.permute.xlu0 %v1583_v11  ;;  %s2212_s22 = sld [smem:[#allocation21_spill]] }
  0xce   : > { %1116 = vmatprep.mubr.f32.mxu0 %v470_v4  ;;  %v549_v12 = vld [vmem:[#allocation2] sm:$0xff]  ;;  %v550_v15 = vld [vmem:[#allocation2 + $0x8] sm:$0xff]  ;;  %v582_v40 = vld [vmem:[#allocation3] sm:$0xff] }
  0xcf   : > { %1134 = vmatprep.subr.bf16.mxu0 %v1133_v5  ;;  %v597_v20 = vld [vmem:[%s387_s11] sm:$0xff]  ;;  %v598_v21 = vld [vmem:[%s387_s11 + $0x8] sm:$0xff] }
  0xd0   : > { %1136 = vmatpush3.bf16.xpose.msra.mxu0 %v1133_v5  ;;  %v1137_v22 = vpack.c.bf16 %v598_v21, %v597_v20  ;;  %v702_v23 = vmul.f32 %v597_v20, %v597_v20  ;;  %v703_v24 = vmul.f32 %v598_v21, %v598_v21  ;;  %v583_v44 = vld [vmem:[#allocation3 + $0x8] sm:$0xff]  ;;  %v600_v48 = vld [vmem:[#allocation4 + $0x8] sm:$0xff]  ;;  %v599_v50 = vld [vmem:[#allocation4] sm:$0xff] }
  0xd1   : > { %v699_v53 = vld [vmem:[#allocation5 + $0x8] sm:$0xff]  ;;  %v698_v56 = vld [vmem:[#allocation5] sm:$0xff] }
  0xd2   : > { %1138 = vmatprep.subr.bf16.mxu1 %v1137_v22  ;;  %v1141_v25 = vpack.c.bf16 %v703_v24, %v702_v23 }
  0xd3   : > { %1140 = vmatpush3.bf16.msra.mxu1 %v1137_v22  ;;  %p1091_p5 = scmp.ne.s32.totalorder %s2212_s22, 2 }
  0xd4   : > { %1142 = vmatprep.subr.bf16.mxu1 %v1141_v25  ;;  %v1584_v4 = vmov (!%p1091_p5), 0   ;;  %v831_v23 = vld [vmem:[%s396_s13] sm:$0xff] (!%p1091_p5) }
  0xd5   : > { %v1092_v24 = vld [vmem:[%s452_s10] ss:$0 sm:$0xff] (!%p1091_p5) }
  0xd7   : > { %1117 = vmatmul.mubr.f32.vlgmr.msra.gmra.mrb[0].mxu0 %v471_v6 }
 0x1aa   : > { %v1118_v7 = vpop.f32.mrb[0].mxu0 }
 0x1ab   : > { %v540_v8 = vpop.f32.mrb[1].mxu0  ;;  %v555_v10 = vsel %vm551_vm1, %v1118_v7, -inf }
 0x1ac   : > { %v552_v9 = vsel %vm551_vm1, %v540_v8, -inf }
 0x1ad   : > { %553 = vmax.xlane.f32.xlu0 %v552_v9 }
 0x1b1   : > { %556 = vmax.xlane.f32.xlu0 %v555_v10 }
 0x23a   : > { %v554_v13 = vpop.xlane.xlu0 %553 }
 0x23b   : > { %v558_v14 = vmax.f32 %v549_v12, %v554_v13 }
 0x23d   : > { %v560_v16 = vsub.f32 %v549_v12, %v558_v14  ;;  %783 = vst.msk [vmem:[#allocation2] sm:$0xff] %vm594_vm2, %v558_v14  ;;  %568 = vperm.xlu1 %1288, %v558_v14  }
 0x23e   : > { %v557_v17 = vpop.xlane.xlu0 %556 }
 0x23f   : > { %v559_v18 = vmax.f32 %v550_v15, %v557_v17  ;;  %v562_v36 = vmul.f32 1.442695, %v560_v16 }
 0x241   : > { %v561_v19 = vsub.f32 %v550_v15, %v559_v18  ;;  %784 = vst.msk [vmem:[#allocation2 + $0x8] sm:$0xff] %vm594_vm2, %v559_v18  ;;  %573 = vperm.xlu1 %1288, %v559_v18  }
 0x243   : > { %v564_v37 = vmul.f32 1.442695, %v561_v19 }
 0x2bc   : > { %v569_v26 = vpop.permute.xlu1 %568 }
 0x2bd   : > { %v576_v27 = vsub.f32 %v540_v8, %v569_v26  ;;  %v1093_v26 = vld [vmem:[%s455_s27] ss:$0 sm:$0xff] (!%p1091_p5) }
 0x2bf   : > { %v578_v28 = vmul.f32 1.442695, %v576_v27  ;;  %v832_v27 = vld [vmem:[%s396_s13 + $0x8] sm:$0xff] (!%p1091_p5) }
 0x2c0   : > { %v574_v29 = vpop.permute.xlu1 %573 }
 0x2c1   : > { %1290 = vpow2.f32 %v578_v28  ;;  %v577_v30 = vsub.f32 %v1118_v7, %v574_v29 }
 0x2c3   : > { %v580_v31 = vmul.f32 1.442695, %v577_v30 }
 0x2c5   : > { %1292 = vpow2.f32 %v580_v31 }
 0x2c6   : > { %1294 = vpow2.f32 %v562_v36 }
 0x2c7   : > { %1296 = vpow2.f32 %v564_v37 }
 0x2cb   : > { %v1291_v32 = vpop.eup %1290 }
 0x2cc   : > { %1123 = vmatprep.mubr.msk.f32.mxu1 %vm551_vm1, %v1291_v32  ;;  %v586_v33 = vsel %vm551_vm1, %v1291_v32, 0.0 }
 0x2cd   : > { %587 = vadd.xlane.f32.xlu0 %v586_v33 }
 0x2cf   : > { %v1293_v34 = vpop.eup %1292 }
 0x2d0   : > { %1124 = vmatmul.mubr.msk.f32.vlgmr.msra.gmra.mrb[0].mxu1 %vm551_vm1, %v1293_v34  ;;  %v589_v35 = vsel %vm551_vm1, %v1293_v34, 0.0  ;;  %v1295_v38 = vpop.eup %1294 }
 0x2d1   : > { %1144 = vmatpush3.bf16.msra.mxu1 %v1141_v25  ;;  %1130 = vmatprep.mubr.msk.f32.mxu1 %vm551_vm1, %v1291_v32  ;;  %v1297_v39 = vpop.eup %1296  ;;  %v584_v41 = vmul.f32 %v1295_v38, %v582_v40  ;;  %v840_v25 = vsub.f32 (!%p1091_p5), %v831_v23, %v1092_v24  ;;  %v841_v32 = vsub.f32 (!%p1091_p5), %v832_v27, %v1092_v24 }
 0x2d2   : > { %590 = vadd.xlane.f32.xlu1 %v589_v35  ;;  %v585_v45 = vmul.f32 %v1297_v39, %v583_v44 }
 0x2d3   : > { %v849_v29 = vmul.f32 (!%p1091_p5), %v1093_v26, %v840_v25  ;;  %v850_v37 = vmul.f32 (!%p1091_p5), %v1093_v26, %v841_v32 }
 0x2d4   : > { %1131 = vmatmul.mubr.msk.f32.vlgmr.msra.gmra.mrb[2].mxu1 %vm551_vm1, %v1293_v34 }
 0x2e3   : > { %608 = vperm.xlu1 %1288, %v1297_v39   ;;  %603 = vperm.xlu0 %1289, %v1295_v38  }
 0x2e7   : > { %1298 = vset.pattern.permute.xlu0 (!%p1091_p5), %v1584_v4 }
 0x35a   : > { %v588_v42 = vpop.xlane.xlu0 %587 }
 0x35b   : > { %v592_v43 = vadd.f32 %v588_v42, %v584_v41 }
 0x35d   : > { %595 = vst.msk [vmem:[#allocation3] sm:$0xff] %vm594_vm2, %v592_v43 }
 0x35f   : > { %v591_v46 = vpop.xlane.xlu1 %590 }
 0x360   : > { %v593_v47 = vadd.f32 %v591_v46, %v585_v45 }
 0x362   : > { %596 = vst.msk [vmem:[#allocation3 + $0x8] sm:$0xff] %vm594_vm2, %v593_v47  ;;  %v604_v51 = vpop.permute.xlu0 %603 }
 0x363   : > { %v609_v49 = vpop.permute.xlu1 %608  ;;  %v611_v54 = vmul.f32 %v604_v51, %v599_v50  ;;  %v700_v61 = vmul.f32 %v698_v56, %v604_v51 }
 0x364   : > { %v612_v52 = vmul.f32 %v609_v49, %v600_v48  ;;  %v701_v60 = vmul.f32 %v699_v53, %v609_v49  ;;  %v789_v2 = vld [vmem:[#allocation3] sm:$0xff] (!%p1091_p5) }
 0x365   : > { %1299 = vrcp.f32 (!%p1091_p5), %v789_v2 }
 0x369   : > { %v790_v3 = vld [vmem:[#allocation3 + $0x8] sm:$0xff] (!%p1091_p5) }
 0x36a   : > { %1301 = vrcp.f32 (!%p1091_p5), %v790_v3 }
 0x36f   : > { %v1300_v5 = vpop.eup (!%p1091_p5), %1299 }
 0x370   : > { %797 = vperm.xlu0 (!%p1091_p5), %1298, %v1300_v5  }
 0x374   : > { %v1302_v6 = vpop.eup (!%p1091_p5), %1301 }
 0x375   : > { %802 = vperm.xlu0 (!%p1091_p5), %1298, %v1302_v6  }
 0x3a3   : > { %v1125_v55 = vpop.f32.mrb[0].mxu1 }
 0x3a4   : > { %v695_v57 = vadd.f32 %v1125_v55, %v612_v52  ;;  %v685_v58 = vpop.f32.mrb[1].mxu1 }
 0x3a5   : > { %v694_v59 = vadd.f32 %v685_v58, %v611_v54  ;;  %788 = sbr.rel (%p1091_p5) target bundleno = 1041 (0x411), region = 68 }
 0x3a6   : > { %697 = vst [vmem:[#allocation4 + $0x8] sm:$0xff] %v695_v57 }
 0x3a7   : > { %696 = vst [vmem:[#allocation4] sm:$0xff] %v694_v59  ;;  %v1132_v62 = vpop.f32.mrb[2].mxu1 }
 0x3a8   : > { %v780_v63 = vadd.f32 %v1132_v62, %v701_v60  ;;  %v770_v0 = vpop.f32.mrb[3].mxu1 }
 0x3a9   : > { %v779_v1 = vadd.f32 %v770_v0, %v700_v61 }
 0x3aa   : > { %782 = vst [vmem:[#allocation5 + $0x8] sm:$0xff] %v780_v63 }
 0x3ab   : > { %781 = vst [vmem:[#allocation5] sm:$0xff] %v779_v1 }
 0x3ad   : > { %v794_v11 = vld [vmem:[#allocation4 + $0x8] sm:$0xff] }
 0x3ae   : > { %v793_v7 = vld [vmem:[#allocation4] sm:$0xff] }
 0x3b1   : > { %v808_v16 = vld [vmem:[#allocation5 + $0x8] sm:$0xff] }
 0x3b2   : > { %v807_v8 = vld [vmem:[#allocation5] sm:$0xff] }
 0x3ef   : > { %v798_v9 = vpop.permute.xlu0 %797 }
 0x3f0   : > { %v805_v10 = vmul.f32 %v798_v9, %v793_v7  ;;  %v809_v12 = vmul.f32 %v807_v8, %v798_v9 }
 0x3f2   : > { %v811_v13 = vmul.f32 %v805_v10, %v805_v10 }
 0x3f4   : > { %v803_v14 = vpop.permute.xlu0 %802  ;;  %v813_v15 = vsub.f32 %v809_v12, %v811_v13 }
 0x3f5   : > { %v806_v17 = vmul.f32 %v803_v14, %v794_v11  ;;  %v810_v20 = vmul.f32 %v808_v16, %v803_v14 }
 0x3f6   : > { %v815_v18 = vmax.f32 %v813_v15, 0.0 }
 0x3f7   : > { %v812_v19 = vmul.f32 %v806_v17, %v806_v17 }
 0x3f8   : > { %1303 = vrsqrt.f32 %v815_v18  ;;  %vm819_vm3 = vcmp.eq.f32.partialorder %v815_v18, inf  ;;  %v822_v31 = vand.u32 2147483648, %v815_v18  ;;  %vm821_vm4 = vcmp.eq.f32.partialorder %v815_v18, 0.0 }
 0x3f9   : > { %v814_v21 = vsub.f32 %v810_v20, %v812_v19 }
 0x3fb   : > { %v816_v22 = vmax.f32 %v814_v21, 0.0 }
 0x3fd   : > { %1305 = vrsqrt.f32 %v816_v22  ;;  %vm826_vm5 = vcmp.eq.f32.partialorder %v816_v22, inf  ;;  %v829_v40 = vand.u32 2147483648, %v816_v22  ;;  %vm828_vm6 = vcmp.eq.f32.partialorder %v816_v22, 0.0 }
 0x402   : > { %v1304_v28 = vpop.eup %1303 }
 0x403   : > { %v818_v30 = vmul.f32 %v1304_v28, %v815_v18 }
 0x405   : > { %v820_v33 = vsel %vm819_vm3, %v815_v18, %v818_v30 }
 0x406   : > { %v823_v34 = vsel %vm821_vm4, %v822_v31, %v820_v33 }
 0x407   : > { %v1306_v35 = vpop.eup %1305  ;;  %v851_v36 = vmul.f32 %v849_v29, %v823_v34 }
 0x408   : > { %v825_v38 = vmul.f32 %v1306_v35, %v816_v22 }
 0x409   : > { %v853_v39 = vadd.f32 %v851_v36, %v805_v10 }
 0x40a   : > { %v827_v41 = vsel %vm826_vm5, %v816_v22, %v825_v38 }
 0x40b   : > { %855 = vst [vmem:[%s2009_s28] sm:$0xff] %v853_v39  ;;  %v830_v42 = vsel %vm828_vm6, %v829_v40, %v827_v41 }
 0x40c   : > { %v852_v43 = vmul.f32 %v850_v37, %v830_v42 }
 0x40e   : > { %v854_v44 = vadd.f32 %v852_v43, %v806_v17 }
 0x410   : > { %856 = vst [vmem:[%s2009_s28 + $0x8] sm:$0xff] %v854_v44 }
 0x411 PF: > { %s2215_s6 = sld [smem:[#allocation22_spill]]  ;;  %s2216_s13 = sld [smem:[#allocation23_spill]] }
 0x412   : > { %s2217_s1 = sld [smem:[#allocation30_spill]]  ;;  %s873_s10 = sshll.u32 %s2009_s28, 4  ;;  %s2052_s10 = int_to_ptr.vmem [resolvable:$true] %s873_s10 }
 0x413   : > { %s2218_s19 = sld [smem:[#allocation36_spill]]  ;;  %s858_s17 = scalar_lea.sflag [#allocation8], %s1969_s12 }
 0x414   : > { %s1427_s16 = scalar_lea.vmem %s2052_s10, 256  ;;  %s1585_s15 = smov [#allocation14]  }
 0x415   : > { %p1428_p10 = scmp.ne.s32.totalorder %s2052_s10, %s1427_s16  ;;  %s1431_s28 = sshll.u32 %s1585_s15, 4  ;;  %s1432_s28 = int_to_ptr.vmem [resolvable:$false] %s1431_s28 }
 0x416   : > { %s1433_s11 = scalar_lea.vmem %s1432_s28, 512  ;;  %p1434_p0 = scmp.lt.s32.totalorder %s2052_s10, %s1432_s28 }
 0x417   : > { %s1095_s21 = sshll.u32 %s2215_s6, 1  ;;  %s1096_s5 = sshll.u32 %s2216_s13, 3 }
 0x418   : > { %s870_s20 = sadd.s32 %s1096_s5, %s1095_s21  ;;  %p2219_p4 = scmp.ne.s32.totalorder %s2217_s1, 0 }
 0x419   : > { %s1097_s7 = sshll.u32 %s870_s20, 7  ;;  %p1435_p12 = scmp.lt.s32.totalorder %s1433_s11, %s1427_s16 }
 0x41a   : > { %s2057_s22 = scalar_lea.hbm %s2218_s19, %s1097_s7  ;;  %p1429_p2 = pnand %p1428_p10, %p2219_p4 }
 0x41b   : > { %p1436_p3 = por %p1435_p12, %p1434_p0 }
 0x41c   : > { %p1430_p13 = pneg %p1429_p2 }
 0x41e   : > { %p1437_p1 = pnand %p1436_p3, %p1430_p13 }
 0x420   : > { %1440 = shalt.err (!%p1437_p1)
}
 0x421   : > { %s1441_s14 = scalar_lea.hbm %s2057_s22, 256  ;;  %s1445_s13 = scalar_lea.hbm %s2218_s19, 2048 }
 0x422   : > { %p1442_p6 = scmp.ne.s32.totalorder %s2057_s22, %s1441_s14  ;;  %p1446_p7 = scmp.lt.u32.totalorder %s2057_s22, %s2218_s19 }
 0x423   : > { %p1447_p9 = scmp.lt.u32.totalorder %s1445_s13, %s1441_s14  ;;  %p1449_p10 = scmp.lt.u32.totalorder %s1441_s14, %s2057_s22 }
 0x424   : > { %p1443_p8 = pnand %p1442_p6, %p2219_p4 }
 0x425   : > { %p1448_p5 = por %p1447_p9, %p1446_p7 }
 0x426   : > { %p1444_p11 = pneg %p1443_p8 }
 0x427   : > { %p1450_p2 = por %p1449_p10, %p1448_p5 }
 0x429   : > { %p1451_p13 = pnand %p1450_p2, %p1444_p11 }
 0x42b   : > { %1454 = shalt.err (!%p1451_p13)
}
 0x42c   : > { %s1586_s20 = smov 128   ;;  %s1587_s7 = smov 8  }
 0x42d   : > { %1155 = dma.vmem_to_hbm [thread:$0]  (%p2219_p4), %s2052_s10, 256, %s2057_s22, %s858_s17, %s1586_s20, %s1586_s20, %s1587_s7  }
 0x42e PF: > { %s2220_s29 = sld [smem:[#allocation20_spill]]  ;;  %p1175_p0 = scmp.ge.s32.totalorder %s1573_s9, 2 }
 0x42f   : > { %s2221_s27 = sld [smem:[#allocation32_spill]] }
 0x434   : > { %s888_s16 = sand.u32 1, %s2220_s29  }
 0x435   : > { %p2222_p12 = scmp.ne.s32.totalorder %s2221_s27, 0  ;;  %s889_s15 = scalar_lea.sflag [#allocation8], %s888_s16 }
 0x437   : > { %p1171_p3 = pnand %p1175_p0, %p2222_p12 }
 0x439   : > { %1520 = dma.done.wait (!%p1171_p3), %s889_s15, 256  }
 0x43a   : > { %1522 = vsyncadd (!%p1171_p3), %s889_s15, 4294967040  ;;  %s28_s9 = sadd.s32 1, %s1573_s9   ;;  %s2224_s21 = sld [smem:[#allocation19_spill]] }
 0x43b   : > { %p2088_p1 = scmp.ge.s32.totalorder %s28_s9, 26   ;;  %s2225_s12 = smov %s1839_s24 }
 0x43c   : > { %s2226_s1 = sld [smem:[#allocation24_spill]]  ;;  %s2227_s10 = sld [smem:[#allocation26_spill]] }
 0x43d   : > { %s2228_s7 = sld [smem:[#allocation29_spill]]  ;;  %s2229_s17 = sld [smem:[#allocation31_spill]] }
 0x43e   : > { %s2231_s22 = smov %s1533_s23  ;;  %s2232_s23 = smov %s1844_s18 }
 0x43f   : > { %s2233_s24 = smov %s1541_s25  ;;  %s2234_s25 = smov %s1545_s26 }
 0x440   : > { %s2235_s26 = smov %s2225_s12  ;;  %s2236_s27 = smov %s1561_s30 }
 0x441   : > { %s2238_s29 = smov %s1569_s8  ;;  %27 = sbr.rel (!%p2088_p1) target bundleno = 19 (0x13), region = 140 }
 0x442   : > { %s2237_s28 = smov %s2226_s1  ;;  %s2239_s30 = smov %s2227_s10 }
 0x443   : > { %s2240_s8 = smov %s2229_s17 }
 0x448   :  { %894 = vsyncpa [#allocation7], 1 }
 0x449   :  { %896 = vsyncpa [#allocation7 + $0x1], 1 }
 0x44a   :  { %897 = vsyncpa [#allocation10], 1 }
 0x44b   :  { %899 = vsyncpa [#allocation10 + $0x1], 1 }
 0x44c   :  { %900 = vsyncpa [#allocation13], 1 }
 0x44d   :  { %902 = vsyncpa [#allocation13 + $0x1], 1 }
 0x44e   :  { %903 = vsyncpa [#allocation8], 1 }
 0x44f   :  { %905 = vsyncpa [#allocation8 + $0x1], 1 }

</bundles_post_ra>
